<compile_context>
chip_gen: v7x
topology: tpu7x:2x2x1
jax: 0.10.0
libtpu: 0.0.40
codegen_flags: <defaults>
</compile_context>

<pallas_src>
import math

import jax
import jax.numpy as jnp
from jax.experimental import pallas as pl
from jax.experimental.pallas import tpu as pltpu

LANE = 128


# ----------------------------- kernel ---------------------------------------

def _gauss_kernel(x_ref, m_ref, s_ref, y_ref):
    """y = exp((x - m)^2 * (-(1/s)^2)), computed in f32, cast back on store."""
    m = m_ref[...]                        # (1, F) float32
    s = s_ref[...]                        # (1, F) float32
    inv_s = 1.0 / s                       # exact divide on one tiny row
    neg_inv_s2 = -(inv_s * inv_s)         # (1, F) float32
    x = x_ref[...].astype(jnp.float32)    # (TILE_N, F)
    d = x - m
    y_ref[...] = jnp.exp((d * d) * neg_inv_s2).astype(y_ref.dtype)


# ----------------------------- wrapper ---------------------------------------

def _sublane_align(itemsize):
    if itemsize >= 4:
        return 8
    if itemsize == 2:
        return 16
    return 32


def _choose_tile_rows(n_rows, n_lanes, itemsize, budget_bytes=8 << 20):
    """Row tile: <= ~8 MiB, dtype-aligned, and >= 2 grid steps when possible."""
    align = _sublane_align(itemsize)
    if n_rows <= align:
        return n_rows                       # full-extent block is legal
    max_rows = max(align, budget_bytes // max(1, n_lanes * itemsize))
    # Cap at ~half the rows (rounded up to alignment) so grid >= 2: needed for
    # megacore sharding on v7x and to give the pipeline something to overlap.
    half = -(-n_rows // 2)
    half = ((half + align - 1) // align) * align
    tile = min(n_rows, max_rows, half)
    return max(align, (tile // align) * align)


def _gauss_2d(x2d, m_row, s_row):
    n, f = x2d.shape
    itemsize = jnp.dtype(x2d.dtype).itemsize
    tile_n = _choose_tile_rows(n, f, itemsize)
    grid = (pl.cdiv(n, tile_n),)

    tile_bytes = tile_n * f * itemsize
    # 2 double-buffered tiles (x in, y out) + resident params + headroom.
    vmem_limit = int(min(48 << 20, max(16 << 20, 4 * tile_bytes + (2 << 20))))

    cost = pl.CostEstimate(
        flops=3 * n * f,
        transcendentals=n * f,
        bytes_accessed=2 * n * f * itemsize + 2 * f * 4,
    )

    return pl.pallas_call(
        _gauss_kernel,
        out_shape=jax.ShapeDtypeStruct((n, f), x2d.dtype),
        grid=grid,
        in_specs=[
            pl.BlockSpec((tile_n, f), lambda i: (i, 0)),   # x: tiled over rows
            pl.BlockSpec((1, f), lambda i: (0, 0)),        # m: VMEM-resident f32
            pl.BlockSpec((1, f), lambda i: (0, 0)),        # s: VMEM-resident f32
        ],
        out_specs=pl.BlockSpec((tile_n, f), lambda i: (i, 0)),
        compiler_params=pltpu.CompilerParams(
            dimension_semantics=("parallel",),
            vmem_limit_bytes=vmem_limit,
        ),
        cost_estimate=cost,
    )(x2d, m_row, s_row)


class GaussActivation:
    """JAX/Pallas equivalent of the PyTorch GaussActivation module."""

    def __init__(self, num_features):
        self.num_features = num_features
        self.m = jnp.zeros((num_features,), dtype=jnp.float32)
        self.s = jnp.ones((num_features,), dtype=jnp.float32)
        self._param_cache = {}

    # Cache the prepared (1, F') f32 parameter rows; rebuild only when the
    # underlying parameter arrays change.
    def _param_rows(self, key, build_fn):
        entry = self._param_cache.get(key)
        if entry is not None and entry[0] is self.m and entry[1] is self.s:
            return entry[2], entry[3]
        m32 = self.m.astype(jnp.float32)
        s32 = self.s.astype(jnp.float32)
        m_row, s_row = build_fn(m32, s32)
        self._param_cache[key] = (self.m, self.s, m_row, s_row)
        return m_row, s_row

    def __call__(self, x):
        f = x.shape[-1]
        assert f == self.num_features
        lead = x.shape[:-1]
        n = math.prod(int(d) for d in lead) if lead else 1
        x2d = x.reshape(n, f)

        # Fold factor that makes the lane axis a multiple of 128.
        k = LANE // math.gcd(f, LANE)

        if k == 1:
            # F is already a multiple of 128: lane-dense as-is.
            def build_direct(m, s):
                return m.reshape(1, f), s.reshape(1, f)
            m_row, s_row = self._param_rows(("direct", f), build_direct)
            y2d = _gauss_2d(x2d, m_row, s_row)
        elif n % k == 0 and n >= k:
            # Lane-dense fold: pack k rows into the lane axis (contiguous
            # reshape, no data movement) and tile the params to match.
            def build_fold(m, s):
                return (jnp.tile(m, k).reshape(1, k * f),
                        jnp.tile(s, k).reshape(1, k * f))
            m_row, s_row = self._param_rows(("fold", k, f), build_fold)
            x_fold = x2d.reshape(n // k, k * f)
            y2d = _gauss_2d(x_fold, m_row, s_row).reshape(n, f)
        else:
            # Pad F up to the next multiple of 128: m padded with 0, s with 1
            # (keeps padded lanes finite), output sliced back.
            pad_f = ((f + LANE - 1) // LANE) * LANE

            def build_pad(m, s):
                m_p = jnp.concatenate(
                    [m, jnp.zeros((pad_f - f,), jnp.float32)]).reshape(1, pad_f)
                s_p = jnp.concatenate(
                    [s, jnp.ones((pad_f - f,), jnp.float32)]).reshape(1, pad_f)
                return m_p, s_p

            m_row, s_row = self._param_rows(("pad", pad_f), build_pad)
            x_pad = jnp.pad(x2d, ((0, 0), (0, pad_f - f)))
            y2d = _gauss_2d(x_pad, m_row, s_row)[:, :f]

        return y2d.reshape(*lead, f)


# ------------------------------- main ----------------------------------------

if __name__ == "__main__":
    key = jax.random.PRNGKey(0)
    k_x, k_m, k_s = jax.random.split(key, 3)

    batch, seq, num_features = 2, 8, 32
    x = jax.random.normal(k_x, (batch, seq, num_features), dtype=jnp.float32)

    layer = GaussActivation(num_features)
    # Perturb parameters away from the trivial (0, 1) init so broadcasting of
    # m and s is actually exercised.
    layer.m = 0.1 * jax.random.normal(k_m, (num_features,), dtype=jnp.float32)
    layer.s = 1.0 + 0.1 * jax.random.uniform(k_s, (num_features,), dtype=jnp.float32)

    y = layer(x)
    y = jax.block_until_ready(y)

    # Pure-JAX reference (matches the PyTorch forward).
    z_ref = (x - layer.m) / layer.s
    y_ref = jnp.exp(-(z_ref ** 2))

    if not bool(jnp.allclose(y, y_ref, atol=1e-5, rtol=1e-5)):
        raise AssertionError("Pallas GaussActivation mismatch vs reference")

    print("KERNEL_OK")
</pallas_src>

<mosaic_0001>
module attributes {stable_mosaic.version = 11 : i64} {
  func.func @_gauss_kernel(%arg0: i32, %arg1: memref<4x128xf32, #tpu.memory_space<vmem>>, %arg2: memref<1x128xf32, #tpu.memory_space<vmem>>, %arg3: memref<1x128xf32, #tpu.memory_space<vmem>>, %arg4: memref<4x128xf32, #tpu.memory_space<vmem>>) attributes {dimension_semantics = [#tpu.dimension_semantics<parallel>], iteration_bounds = array<i64: 1>, scalar_prefetch = 0 : i64, scratch_operands = 0 : i64, tpu.core_type = #tpu.core_type<tc>, window_params = [{transform_indices = @transform_0, window_bounds = array<i64: 4, 128>}, {pipeline_mode = #tpu.pipeline_mode<synchronous>, transform_indices = @transform_1, window_bounds = array<i64: 1, 128>}, {pipeline_mode = #tpu.pipeline_mode<synchronous>, transform_indices = @transform_2, window_bounds = array<i64: 1, 128>}, {transform_indices = @transform_3, window_bounds = array<i64: 4, 128>}]} {
    %c0 = arith.constant 0 : index
    %c0_0 = arith.constant 0 : index
    %0 = vector.load %arg2[%c0, %c0_0] : memref<1x128xf32, #tpu.memory_space<vmem>>, vector<1x128xf32>
    %c0_1 = arith.constant 0 : index
    %c0_2 = arith.constant 0 : index
    %1 = vector.load %arg3[%c0_1, %c0_2] : memref<1x128xf32, #tpu.memory_space<vmem>>, vector<1x128xf32>
    %cst = arith.constant 1.000000e+00 : f32
    %2 = vector.broadcast %cst : f32 to vector<1x128xf32>
    %3 = arith.divf %2, %1 : vector<1x128xf32>
    %4 = arith.mulf %3, %3 : vector<1x128xf32>
    %cst_3 = arith.constant 0.000000e+00 : f32
    %5 = vector.broadcast %cst_3 : f32 to vector<1x128xf32>
    %6 = arith.subf %5, %4 : vector<1x128xf32>
    %c0_4 = arith.constant 0 : index
    %c0_5 = arith.constant 0 : index
    %7 = vector.load %arg1[%c0_4, %c0_5] : memref<4x128xf32, #tpu.memory_space<vmem>>, vector<4x128xf32>
    %8 = vector.broadcast %0 : vector<1x128xf32> to vector<4x128xf32>
    %9 = arith.subf %7, %8 : vector<4x128xf32>
    %10 = arith.mulf %9, %9 : vector<4x128xf32>
    %11 = vector.broadcast %6 : vector<1x128xf32> to vector<4x128xf32>
    %12 = arith.mulf %10, %11 : vector<4x128xf32>
    %13 = math.exp %12 : vector<4x128xf32>
    %c0_6 = arith.constant 0 : index
    %c0_7 = arith.constant 0 : index
    %14 = vector.load %arg4[%c0_6, %c0_7] : memref<4x128xf32, #tpu.memory_space<vmem>>, vector<4x128xf32>
    tpu.vector_store %arg4[%c0_6, %c0_7], %13 {strides = array<i32>} : memref<4x128xf32, #tpu.memory_space<vmem>>, vector<4x128xf32>,
    return
  }
  func.func @transform_0(%arg0: i32) -> (i32, i32) {
    %c0_i32 = arith.constant 0 : i32
    %c0_i32_0 = arith.constant 0 : i32
    return %arg0, %c0_i32 : i32, i32
  }
  func.func @transform_1(%arg0: i32) -> (i32, i32) {
    %c0_i32 = arith.constant 0 : i32
    %c0_i32_0 = arith.constant 0 : i32
    %c0_i32_1 = arith.constant 0 : i32
    return %c0_i32, %c0_i32_0 : i32, i32
  }
  func.func @transform_2(%arg0: i32) -> (i32, i32) {
    %c0_i32 = arith.constant 0 : i32
    %c0_i32_0 = arith.constant 0 : i32
    %c0_i32_1 = arith.constant 0 : i32
    return %c0_i32, %c0_i32_0 : i32, i32
  }
  func.func @transform_3(%arg0: i32) -> (i32, i32) {
    %c0_i32 = arith.constant 0 : i32
    %c0_i32_0 = arith.constant 0 : i32
    return %arg0, %c0_i32 : i32, i32
  }
}

</mosaic_0001>

<bundles_post_ra>
// kernel: tpu_custom_call.1
= control target key start
LH: loop header
LB: loop body
LE: loop exit
PB: predicated region body
PF: predicated region fallthrough
CT: control target
= control target key end

     0   :  { %8 = vsyncpa [#allocation3], 0  ;;  %s174_s0 = inlined_call_operand.hbm [shape: f32[4,128], index: 0, kind: input, shape index: {}]   ;;  %s175_s1 = inlined_call_operand.vmem [shape: f32[1,128], index: 1, kind: input, shape index: {}]   ;;  %s176_s2 = inlined_call_operand.vmem [shape: f32[1,128], index: 2, kind: input, shape index: {}]   ;;  %s177_s3 = inlined_call_operand.hbm [shape: f32[4,128], index: 3, kind: output, shape index: {}]  }
   0x1   :  { %9 = vsyncpa [#allocation4], 0  ;;  %s122_s12 = smov [#allocation2]   ;;  %s74_s16 = scalar_lea.hbm %s174_s0, 64 }
   0x2   :  { %s16_s13 = sshll.u32 %s122_s12, 4  ;;  %p75_p0 = scmp.ne.s32.totalorder %s174_s0, %s74_s16  ;;  %s17_s13 = int_to_ptr.vmem [resolvable:$true] %s16_s13 }
   0x3   :  { %p78_p1 = scmp.lt.u32.totalorder %s74_s16, %s174_s0 }
   0x5   :  { %p80_p2 = pnand %p78_p1, %p75_p0 }
   0x7   :  { %83 = shalt.err (!%p80_p2)
}
   0x8   :  { %s84_s21 = scalar_lea.vmem %s17_s13, 64  ;;  %p89_p4 = scmp.lt.s32.totalorder %s17_s13, %s17_s13 }
   0x9   :  { %p85_p3 = scmp.ne.s32.totalorder %s17_s13, %s84_s21  ;;  %p90_p5 = scmp.lt.s32.totalorder %s84_s21, %s84_s21 }
   0xb   :  { %p91_p6 = por %p90_p5, %p89_p4 }
   0xd   :  { %p92_p7 = pnand %p91_p6, %p85_p3 }
   0xf   :  { %95 = shalt.err (!%p92_p7)
}
  0x10   :  { %19 = dma.hbm_to_vmem [thread:$0]  %s174_s0, 64, %s17_s13, [#allocation3]  }
  0x11   :  { %118 = dma.done.wait [#allocation3], 64  }
  0x12   :  { %119 = vsyncadd [#allocation3], 4294967232  ;;  %v28_v0 = vld [vmem:[%s176_s2] sm:$0x1]  ;;  %v43_v1 = vlaneseq  ;;  %s123_s0 = smov [#allocation5]  }
  0x13   :  { %70 = vrcp.f32 %v28_v0  ;;  %v67_v2 = vld [vmem:[%s175_s1] ss:$0 sm:$0xff]  ;;  %s58_s2 = sshll.u32 %s123_s0, 4  ;;  %s59_s2 = int_to_ptr.vmem [resolvable:$true] %s58_s2 }
  0x14   :  { %v33_v3 = vld [vmem:[#allocation2] sm:$0xf]  ;;  %v44_v4 = vshrl.u32 %v43_v1, 7  ;;  %s96_s28 = scalar_lea.vmem %s59_s2, 64  ;;  %p101_p9 = scmp.lt.s32.totalorder %s59_s2, %s59_s2 }
  0x15   :  { %v40_v5 = vsub.f32 %v33_v3, %v67_v2  ;;  %p97_p8 = scmp.ne.s32.totalorder %s59_s2, %s96_s28  ;;  %p102_p10 = scmp.lt.s32.totalorder %s96_s28, %s96_s28 }
  0x16   :  { %v45_v8 = vsub.s32 0, %v44_v4 }
  0x17   :  { %v41_v10 = vmul.f32 %v40_v5, %v40_v5  ;;  %p103_p11 = por %p102_p10, %p101_p9 }
  0x19   :  { %p104_p12 = pnand %p103_p11, %p97_p8 }
  0x1d   :  { %v71_v6 = vpop.eup %70 }
  0x1e   :  { %v31_v7 = vmul.f32 %v71_v6, %v71_v6 }
  0x20   :  { %v32_v9 = vsub.f32 0.0, %v31_v7 }
  0x22   :  { %v46_v11 = vrot.slane %v32_v9, %v45_v8 }
  0x24   :  { %v48_v12 = vmul.f32 %v46_v11, %v41_v10 }
  0x26   :  { %v49_v13 = vmul.f32 1.442695, %v48_v12 }
  0x28   :  { %72 = vpow2.f32 %v49_v13 }
  0x32   :  { %v73_v14 = vpop.eup %72 }
  0x33   :  { %51 = vst [vmem:[#allocation5] sm:$0xf] %v73_v14 }
  0x34   :  { %107 = shalt.err (!%p104_p12)
}
  0x35   :  { %s108_s30 = scalar_lea.hbm %s177_s3, 64 }
  0x36   :  { %p109_p13 = scmp.ne.s32.totalorder %s177_s3, %s108_s30  ;;  %p112_p0 = scmp.lt.u32.totalorder %s108_s30, %s177_s3 }
  0x38   :  { %p114_p1 = pnand %p112_p0, %p109_p13 }
  0x3a   :  { %117 = shalt.err (!%p114_p1)
}
  0x3b   :  { %61 = dma.vmem_to_hbm [thread:$0]  %s59_s2, 64, %s177_s3, [#allocation4]  }
  0x3c   :  { %120 = dma.done.wait [#allocation4], 64  }
  0x3d   :  { %121 = vsyncadd [#allocation4], 4294967232 }
  0x3e   :  { %65 = vsyncpa [#allocation3], 1 }
  0x3f   :  { %66 = vsyncpa [#allocation4], 1 }

</bundles_post_ra>
